<compile_context>
chip_gen: v7x
topology: tpu7x:2x2x1
jax: 0.10.0
libtpu: 0.0.40
codegen_flags: <defaults>
</compile_context>

<pallas_src>
import functools

import jax
import jax.numpy as jnp
from jax import lax
from jax.experimental import pallas as pl
from jax.experimental.pallas import tpu as pltpu

LAMBD = 0.6   # loss = lambd * trigger + (1 - lambd) * argument
ALPHA = 0.3   # focal weight param
GAMMA = 2     # focal weight param (gamma == 2 is hard-wired as x*x below)

_LANES = 128
# (block_rows, 128) f32 tile ~= 256 KiB -> 2 inputs x 2 pipeline buffers ~= 1 MiB,
# comfortably inside the default scoped VMEM on v5e (16 MiB) / v6e (32) / v7x (32).
_MAX_BLOCK_ROWS = 512


def _round_up(x, m):
    return ((x + m - 1) // m) * m


def _joint_ee_loss_kernel(p_ref, y_ref, out_ref, acc_ref, *,
                          trig_end_idx, valid_end_idx,
                          trig_scale, arg_scale, block_elems):
    @pl.when(pl.program_id(0) == 0)
    def _():
        acc_ref[...] = jnp.zeros_like(acc_ref)

    p = p_ref[...].astype(jnp.float32)
    y = y_ref[...].astype(jnp.float32)

    # Labels are hard {0, 1}.
    # TODO(synk): if soft labels are ever used, fall back to the two-log
    # BCE / focal form; this select form assumes binary labels.
    y_pos = y > 0.5

    one_minus_p = 1.0 - p
    # Focal weight, gamma=2 as an explicit VPU multiply.
    w = jnp.where(y_pos,
                  ALPHA * one_minus_p * one_minus_p,
                  (1.0 - ALPHA) * p * p)
    # BCE with PyTorch's log clamp at -100; a single log per element.
    q = jnp.where(y_pos, p, one_minus_p)
    bce = -jnp.maximum(jnp.log(q), -100.0)

    # Per-element scale: region weight (lambd / 1-lambd) * per-tensor 1/N,
    # and 0 for tail padding. Computed from the global flat index.
    base = pl.program_id(0) * block_elems
    rows = lax.broadcasted_iota(jnp.int32, p.shape, 0)
    cols = lax.broadcasted_iota(jnp.int32, p.shape, 1)
    idx = base + rows * _LANES + cols
    scale = jnp.where(idx < trig_end_idx,
                      jnp.float32(trig_scale),
                      jnp.where(idx < valid_end_idx,
                                jnp.float32(arg_scale),
                                jnp.float32(0.0)))

    # Pure VPU accumulation; no cross-lane reduce in the hot loop.
    acc_ref[...] += scale * w * bce

    @pl.when(pl.program_id(0) == pl.num_programs(0) - 1)
    def _():
        # Single XLU reduction at the end.
        out_ref[0] = jnp.sum(acc_ref[...])


def joint_ee_loss(
    trigger_start, trigger_end, trigger_label_start, trigger_label_end,
    argument_start, argument_end, argument_label_start, argument_label_end,
):
    """Pallas implementation of JointEE_Loss.forward. Returns a scalar float32."""
    assert trigger_start.shape == trigger_label_start.shape
    assert trigger_end.shape == trigger_label_end.shape
    assert argument_start.shape == argument_label_start.shape
    assert argument_end.shape == argument_label_end.shape

    n_trig = trigger_start.size          # elements per trigger tensor
    n_arg = argument_start.size          # elements per argument tensor
    trig_end_idx = 2 * n_trig            # [0, trig_end_idx)  -> trigger region
    valid_end_idx = trig_end_idx + 2 * n_arg  # [trig_end_idx, valid_end_idx) -> argument

    preds = [trigger_start, trigger_end, argument_start, argument_end]
    labels = [trigger_label_start, trigger_label_end,
              argument_label_start, argument_label_end]
    # Keep the incoming (possibly bf16) dtype in HBM; cast to f32 inside the kernel.
    p_dtype = jnp.result_type(*[x.dtype for x in preds])
    y_dtype = jnp.result_type(*[x.dtype for x in labels])

    rows_needed = pl.cdiv(valid_end_idx, _LANES)
    block_rows = min(_MAX_BLOCK_ROWS, _round_up(rows_needed, 8))
    total_rows = _round_up(rows_needed, block_rows)
    grid_n = total_rows // block_rows
    total_elems = total_rows * _LANES

    def pack(xs, dtype):
        flat = jnp.concatenate([jnp.asarray(x, dtype).reshape(-1) for x in xs])
        # Pad with zeros: p=0, y=0 => w = 0 and bce = 0 (and scale = 0 anyway).
        flat = jnp.pad(flat, (0, total_elems - valid_end_idx))
        return flat.reshape(total_rows, _LANES)

    p_slab = pack(preds, p_dtype)
    y_slab = pack(labels, y_dtype)

    kernel = functools.partial(
        _joint_ee_loss_kernel,
        trig_end_idx=trig_end_idx,
        valid_end_idx=valid_end_idx,
        trig_scale=float(LAMBD) / float(n_trig),
        arg_scale=(1.0 - float(LAMBD)) / float(n_arg),
        block_elems=block_rows * _LANES,
    )

    out = pl.pallas_call(
        kernel,
        grid=(grid_n,),
        in_specs=[
            pl.BlockSpec((block_rows, _LANES), lambda i: (i, 0)),
            pl.BlockSpec((block_rows, _LANES), lambda i: (i, 0)),
        ],
        out_specs=pl.BlockSpec(memory_space=pltpu.SMEM),
        out_shape=jax.ShapeDtypeStruct((1,), jnp.float32),
        scratch_shapes=[pltpu.VMEM((block_rows, _LANES), jnp.float32)],
        compiler_params=pltpu.CompilerParams(
            dimension_semantics=("arbitrary",),
            vmem_limit_bytes=32 << 20,
        ),
    )(p_slab, y_slab)
    return out[0]


def joint_ee_loss_ref(ts, te, tls, tle, as_, ae, als, ale):
    """Pure-JAX reference mirroring the PyTorch forward (two-log BCE form)."""
    def m(p, y):
        p = p.astype(jnp.float32)
        y = y.astype(jnp.float32)
        w = (ALPHA * y * jnp.power(1.0 - p, GAMMA)
             + (1.0 - ALPHA) * (1.0 - y) * jnp.power(p, GAMMA))
        log_p = jnp.maximum(jnp.log(p), -100.0)
        log_1mp = jnp.maximum(jnp.log(1.0 - p), -100.0)
        bce = -(y * log_p + (1.0 - y) * log_1mp)
        return jnp.mean(w * bce)

    trigger_loss = m(ts, tls) + m(te, tle)
    argument_loss = m(as_, als) + m(ae, ale)
    return LAMBD * trigger_loss + (1.0 - LAMBD) * argument_loss


if __name__ == "__main__":
    key = jax.random.PRNGKey(0)
    bsz, seq_l, role_cnt = 2, 8, 4

    ks = jax.random.split(key, 8)
    # predictions are probabilities (outputs of sigmoid in the upstream model)
    trigger_start = jax.nn.sigmoid(jax.random.normal(ks[0], (bsz, seq_l, 1)))
    trigger_end = jax.nn.sigmoid(jax.random.normal(ks[1], (bsz, seq_l, 1)))
    argument_start = jax.nn.sigmoid(jax.random.normal(ks[2], (bsz, seq_l, role_cnt)))
    argument_end = jax.nn.sigmoid(jax.random.normal(ks[3], (bsz, seq_l, role_cnt)))
    # labels are 0/1 floats
    trigger_label_start = jax.random.bernoulli(ks[4], 0.2, (bsz, seq_l, 1)).astype(jnp.float32)
    trigger_label_end = jax.random.bernoulli(ks[5], 0.2, (bsz, seq_l, 1)).astype(jnp.float32)
    argument_label_start = jax.random.bernoulli(ks[6], 0.2, (bsz, seq_l, role_cnt)).astype(jnp.float32)
    argument_label_end = jax.random.bernoulli(ks[7], 0.2, (bsz, seq_l, role_cnt)).astype(jnp.float32)

    loss = joint_ee_loss(
        trigger_start, trigger_end, trigger_label_start, trigger_label_end,
        argument_start, argument_end, argument_label_start, argument_label_end,
    )
    loss = jax.block_until_ready(loss)

    ref = joint_ee_loss_ref(
        trigger_start, trigger_end, trigger_label_start, trigger_label_end,
        argument_start, argument_end, argument_label_start, argument_label_end,
    )

    assert jnp.allclose(loss, ref, rtol=1e-5, atol=1e-6), (loss, ref)
    # TODO(synk): host-side bookkeeping (last_*_loss / numpy snapshots of preds)
    # from the PyTorch module is stateful host code, not part of the kernel.
    print("KERNEL_OK")
</pallas_src>

<mosaic_0001>
module attributes {stable_mosaic.version = 11 : i64} {
  func.func @_joint_ee_loss_kernel(%arg0: i32, %arg1: memref<8x128xf32, #tpu.memory_space<vmem>>, %arg2: memref<8x128xf32, #tpu.memory_space<vmem>>, %arg3: memref<1xf32, #tpu.memory_space<smem>>, %arg4: memref<8x128xf32, #tpu.memory_space<vmem>>) attributes {dimension_semantics = [#tpu.dimension_semantics<arbitrary>], iteration_bounds = array<i64: 1>, scalar_prefetch = 0 : i64, scratch_operands = 1 : i64, tpu.core_type = #tpu.core_type<tc>, window_params = [{transform_indices = @transform_0, window_bounds = array<i64: 8, 128>}, {transform_indices = @transform_1, window_bounds = array<i64: 8, 128>}, {transform_indices = @transform_2, window_bounds = array<i64: 1>}]} {
    %c0_i32 = arith.constant 0 : i32
    %0 = arith.cmpi eq, %arg0, %c0_i32 : i32
    %1 = arith.extui %0 : i1 to i32
    %c0_i32_0 = arith.constant 0 : i32
    %2 = arith.cmpi ne, %1, %c0_i32_0 : i32
    scf.if %2 {
      %cst_18 = arith.constant 0.000000e+00 : f32
      %47 = vector.broadcast %cst_18 : f32 to vector<8x128xf32>
      %c0_19 = arith.constant 0 : index
      %c0_20 = arith.constant 0 : index
      %48 = vector.load %arg4[%c0_19, %c0_20] : memref<8x128xf32, #tpu.memory_space<vmem>>, vector<8x128xf32>
      tpu.vector_store %arg4[%c0_19, %c0_20], %47 {strides = array<i32>} : memref<8x128xf32, #tpu.memory_space<vmem>>, vector<8x128xf32>,
    } else {
    }
    %c0 = arith.constant 0 : index
    %c0_1 = arith.constant 0 : index
    %3 = vector.load %arg1[%c0, %c0_1] : memref<8x128xf32, #tpu.memory_space<vmem>>, vector<8x128xf32>
    %c0_2 = arith.constant 0 : index
    %c0_3 = arith.constant 0 : index
    %4 = vector.load %arg2[%c0_2, %c0_3] : memref<8x128xf32, #tpu.memory_space<vmem>>, vector<8x128xf32>
    %cst = arith.constant 5.000000e-01 : f32
    %5 = vector.broadcast %cst : f32 to vector<8x128xf32>
    %6 = arith.cmpf ogt, %4, %5 : vector<8x128xf32>
    %cst_4 = arith.constant 1.000000e+00 : f32
    %7 = vector.broadcast %cst_4 : f32 to vector<8x128xf32>
    %8 = arith.subf %7, %3 : vector<8x128xf32>
    %cst_5 = arith.constant 3.000000e-01 : f32
    %9 = vector.broadcast %cst_5 : f32 to vector<8x128xf32>
    %10 = arith.mulf %9, %8 : vector<8x128xf32>
    %11 = arith.mulf %10, %8 : vector<8x128xf32>
    %cst_6 = arith.constant 0.699999988 : f32
    %12 = vector.broadcast %cst_6 : f32 to vector<8x128xf32>
    %13 = arith.mulf %12, %3 : vector<8x128xf32>
    %14 = arith.mulf %13, %3 : vector<8x128xf32>
    %15 = arith.select %6, %11, %14 : vector<8x128xi1>, vector<8x128xf32>
    %16 = arith.select %6, %3, %8 : vector<8x128xi1>, vector<8x128xf32>
    %17 = math.log %16 : vector<8x128xf32>
    %cst_7 = arith.constant -1.000000e+02 : f32
    %18 = vector.broadcast %cst_7 : f32 to vector<8x128xf32>
    %19 = arith.maximumf %17, %18 : vector<8x128xf32>
    %cst_8 = arith.constant 0.000000e+00 : f32
    %20 = vector.broadcast %cst_8 : f32 to vector<8x128xf32>
    %21 = arith.subf %20, %19 : vector<8x128xf32>
    %c1024_i32 = arith.constant 1024 : i32
    %22 = arith.muli %arg0, %c1024_i32 : i32
    %23 = tpu.iota {dimensions = array<i32: 0>} : vector<8x128xi32>
    %24 = tpu.iota {dimensions = array<i32: 1>} : vector<8x128xi32>
    %c128_i32 = arith.constant 128 : i32
    %25 = vector.broadcast %c128_i32 : i32 to vector<8x128xi32>
    %26 = arith.muli %23, %25 : vector<8x128xi32>
    %27 = vector.broadcast %22 : i32 to vector<8x128xi32>
    %28 = arith.addi %27, %26 : vector<8x128xi32>
    %29 = arith.addi %28, %24 : vector<8x128xi32>
    %c32_i32 = arith.constant 32 : i32
    %30 = vector.broadcast %c32_i32 : i32 to vector<8x128xi32>
    %31 = arith.cmpi slt, %29, %30 : vector<8x128xi32>
    %c160_i32 = arith.constant 160 : i32
    %32 = vector.broadcast %c160_i32 : i32 to vector<8x128xi32>
    %33 = arith.cmpi slt, %29, %32 : vector<8x128xi32>
    %cst_9 = arith.constant 6.250000e-03 : f32
    %cst_10 = arith.constant 0.000000e+00 : f32
    %34 = vector.broadcast %cst_9 : f32 to vector<8x128xf32>
    %35 = vector.broadcast %cst_10 : f32 to vector<8x128xf32>
    %36 = arith.select %33, %34, %35 : vector<8x128xi1>, vector<8x128xf32>
    %cst_11 = arith.constant 3.750000e-02 : f32
    %37 = vector.broadcast %cst_11 : f32 to vector<8x128xf32>
    %38 = arith.select %31, %37, %36 : vector<8x128xi1>, vector<8x128xf32>
    %c0_12 = arith.constant 0 : index
    %c0_13 = arith.constant 0 : index
    %39 = vector.load %arg4[%c0_12, %c0_13] : memref<8x128xf32, #tpu.memory_space<vmem>>, vector<8x128xf32>
    %40 = arith.mulf %38, %15 : vector<8x128xf32>
    %41 = arith.mulf %40, %21 : vector<8x128xf32>
    %42 = arith.addf %39, %41 : vector<8x128xf32>
    %c0_14 = arith.constant 0 : index
    %c0_15 = arith.constant 0 : index
    %43 = vector.load %arg4[%c0_14, %c0_15] : memref<8x128xf32, #tpu.memory_space<vmem>>, vector<8x128xf32>
    tpu.vector_store %arg4[%c0_14, %c0_15], %42 {strides = array<i32>} : memref<8x128xf32, #tpu.memory_space<vmem>>, vector<8x128xf32>,
    %c0_i32_16 = arith.constant 0 : i32
    %44 = arith.cmpi eq, %arg0, %c0_i32_16 : i32
    %45 = arith.extui %44 : i1 to i32
    %c0_i32_17 = arith.constant 0 : i32
    %46 = arith.cmpi ne, %45, %c0_i32_17 : i32
    scf.if %46 {
      %c0_18 = arith.constant 0 : index
      %c0_19 = arith.constant 0 : index
      %47 = vector.load %arg4[%c0_18, %c0_19] : memref<8x128xf32, #tpu.memory_space<vmem>>, vector<8x128xf32>
      %48 = vector.shape_cast %47 : vector<8x128xf32> to vector<1x8x128xf32>
      %cst_20 = arith.constant dense<0.000000e+00> : vector<1xf32>
      %49 = vector.multi_reduction <add>, %48, %cst_20 [1, 2] : vector<1x8x128xf32> to vector<1xf32>
      %50 = vector.shape_cast %49 : vector<1xf32> to vector<1x1x1xf32>
      %51 = vector.extract %50[0, 0, 0] : f32 from vector<1x1x1xf32>
      %c0_21 = arith.constant 0 : index
      %52 = memref.load %arg3[%c0_21] : memref<1xf32, #tpu.memory_space<smem>>
      memref.store %51, %arg3[%c0_21] : memref<1xf32, #tpu.memory_space<smem>>
    } else {
    }
    return
  }
  func.func @transform_0(%arg0: i32) -> (i32, i32) {
    %c0_i32 = arith.constant 0 : i32
    %c0_i32_0 = arith.constant 0 : i32
    return %arg0, %c0_i32 : i32, i32
  }
  func.func @transform_1(%arg0: i32) -> (i32, i32) {
    %c0_i32 = arith.constant 0 : i32
    %c0_i32_0 = arith.constant 0 : i32
    return %arg0, %c0_i32 : i32, i32
  }
  func.func @transform_2(%arg0: i32) -> i32 {
    %c0_i32 = arith.constant 0 : i32
    %c0_i32_0 = arith.constant 0 : i32
    return %c0_i32 : i32
  }
}

</mosaic_0001>

<bundles_post_ra>
// kernel: tpu_custom_call.1
= control target key start
LH: loop header
LB: loop body
LE: loop exit
PB: predicated region body
PF: predicated region fallthrough
CT: control target
= control target key end

     0   :  { %7 = vsyncpa [#allocation4], 0  ;;  %s226_s0 = inlined_call_operand.hbm [shape: f32[8,128], index: 0, kind: input, shape index: {}]   ;;  %s227_s1 = inlined_call_operand.hbm [shape: f32[8,128], index: 1, kind: input, shape index: {}]   ;;  %s228_s2 = inlined_call_operand.hbm [shape: f32[1], index: 2, kind: output, shape index: {}]  }
   0x1   :  { %8 = vsyncpa [#allocation7], 0 }
   0x2   :  { %9 = vsyncpa [#allocation5], 0  ;;  %s171_s9 = smov [#allocation3]   ;;  %s172_s11 = smov [#allocation6]  }
   0x3   :  { %s16_s10 = sshll.u32 %s171_s9, 4  ;;  %s26_s12 = sshll.u32 %s172_s11, 4  ;;  %s17_s10 = int_to_ptr.vmem [resolvable:$true] %s16_s10  ;;  %s27_s12 = int_to_ptr.vmem [resolvable:$true] %s26_s12 }
   0x4   :  { %s111_s15 = scalar_lea.hbm %s226_s0, 128 }
   0x5   :  { %p112_p0 = scmp.ne.s32.totalorder %s226_s0, %s111_s15  ;;  %p115_p1 = scmp.lt.u32.totalorder %s111_s15, %s226_s0 }
   0x7   :  { %p117_p2 = pnand %p115_p1, %p112_p0 }
   0x9   :  { %120 = shalt.err (!%p117_p2)
}
   0xa   :  { %s121_s20 = scalar_lea.vmem %s17_s10, 128  ;;  %p126_p4 = scmp.lt.s32.totalorder %s17_s10, %s17_s10 }
   0xb   :  { %p122_p3 = scmp.ne.s32.totalorder %s17_s10, %s121_s20  ;;  %p127_p5 = scmp.lt.s32.totalorder %s121_s20, %s121_s20 }
   0xd   :  { %p128_p6 = por %p127_p5, %p126_p4 }
   0xf   :  { %p129_p7 = pnand %p128_p6, %p122_p3 }
  0x11   :  { %132 = shalt.err (!%p129_p7)
}
  0x12   :  { %19 = dma.hbm_to_vmem [thread:$0]  %s226_s0, 128, %s17_s10, [#allocation4]  }
  0x13   :  { %s133_s25 = scalar_lea.hbm %s227_s1, 128 }
  0x14   :  { %p134_p8 = scmp.ne.s32.totalorder %s227_s1, %s133_s25  ;;  %p137_p9 = scmp.lt.u32.totalorder %s133_s25, %s227_s1 }
  0x16   :  { %p139_p10 = pnand %p137_p9, %p134_p8 }
  0x18   :  { %142 = shalt.err (!%p139_p10)
}
  0x19   :  { %s143_s30 = scalar_lea.vmem %s27_s12, 128  ;;  %p148_p12 = scmp.lt.s32.totalorder %s27_s12, %s27_s12 }
  0x1a   :  { %p144_p11 = scmp.ne.s32.totalorder %s27_s12, %s143_s30  ;;  %p149_p13 = scmp.lt.s32.totalorder %s143_s30, %s143_s30 }
  0x1c   :  { %p150_p0 = por %p149_p13, %p148_p12 }
  0x1e   :  { %p151_p1 = pnand %p150_p0, %p144_p11 }
  0x20   :  { %154 = shalt.err (!%p151_p1)
}
  0x21   :  { %29 = dma.hbm_to_vmem [thread:$0]  %s227_s1, 128, %s27_s12, [#allocation7]  }
  0x22   :  { %165 = dma.done.wait [#allocation4], 128  }
  0x23   :  { %166 = vsyncadd [#allocation4], 4294967168 }
  0x24   :  { %167 = dma.done.wait [#allocation7], 128  }
  0x25   :  { %168 = vsyncadd [#allocation7], 4294967168  ;;  %v56_v0 = vlaneseq  ;;  %v41_v2 = vld [vmem:[#allocation3] sm:$0xff]  ;;  %v42_v3 = vld [vmem:[#allocation6] sm:$0xff]  ;;  %v173_v13 = vmov 0.0   ;;  %s155_s6 = scalar_lea.hbm %s228_s2, 16 }
  0x26   :  { %vm43_vm0 = vcmp.gt.f32.partialorder %v42_v3, 0.5  ;;  %v44_v6 = vsub.f32 1.0, %v41_v2  ;;  %v47_v10 = vmul.f32 0.7, %v41_v2  ;;  %p156_p2 = scmp.ne.s32.totalorder %s228_s2, %s155_s6  ;;  %p159_p3 = scmp.lt.u32.totalorder %s155_s6, %s228_s2 }
  0x27   :  { %v57_v1 = vshrl.u32 %v56_v0, 7  ;;  %v59_v4 = vand.u32 127, %v56_v0 }
  0x28   :  { %v50_v7 = vsel %vm43_vm0, %v41_v2, %v44_v6  ;;  %v45_v9 = vmul.f32 0.3, %v44_v6  ;;  %v48_v12 = vmul.f32 %v47_v10, %v41_v2  ;;  %p161_p4 = pnand %p159_p3, %p156_p2 }
  0x29   :  { %v60_v5 = vmul.u32 128, %v57_v1  ;;  %109 = vlog2.f32 %v50_v7 }
  0x2a   :  { %v46_v11 = vmul.f32 %v45_v9, %v44_v6 }
  0x2b   :  { %v63_v8 = vadd.s32 %v60_v5, %v59_v4 }
  0x2c   :  { %v49_v16 = vsel %vm43_vm0, %v46_v11, %v48_v12 }
  0x2d   :  { %vm65_vm1 = vcmp.lt.s32.totalorder %v63_v8, 160  ;;  %vm64_vm2 = vcmp.lt.s32.totalorder %v63_v8, 32 }
  0x2e   :  { %v66_v14 = vsel %vm65_vm1, 0.00625, %v173_v13 }
  0x2f   :  { %v67_v17 = vsel %vm64_vm2, 0.0375, %v66_v14 }
  0x30   :  { %v69_v20 = vmul.f32 %v67_v17, %v49_v16 }
  0x33   :  { %v110_v15 = vpop.eup %109 }
  0x34   :  { %v52_v18 = vmul.f32 0.6931472, %v110_v15 }
  0x36   :  { %v53_v19 = vmax.f32 %v52_v18, -100.0 }
  0x38   :  { %v54_v21 = vsub.f32 0.0, %v53_v19 }
  0x3a   :  { %v70_v22 = vmul.f32 %v69_v20, %v54_v21 }
  0x3c   :  { %77 = vadd.xlane.f32.xlu0 %v70_v22 }
  0xc9   :  { %v78_v23 = vpop.xlane.xlu0 %77 }
  0xca   :  { %v79_v24 = vrot.slane %v78_v23, 4 }
  0xcc   :  { %v80_v25 = vadd.f32 %v79_v24, %v78_v23 }
  0xce   :  { %v81_v26 = vrot.slane %v80_v25, 2 }
  0xd0   :  { %v82_v27 = vadd.f32 %v81_v26, %v80_v25 }
  0xd2   :  { %v83_v28 = vrot.slane %v82_v27, 1 }
  0xd4   :  { %v84_v29 = vadd.f32 %v83_v28, %v82_v27 }
  0xd6   :  { %103 = vpush %v84_v29 }
 0x107   :  { %s104_s1 = spop %103 }
 0x108   :  { %87 = sst [smem:[#allocation8]] %s104_s1 }
 0x109   :  { %164 = shalt.err (!%p161_p4)
}
 0x10a   :  { %s174_s11 = smov [#allocation8]  }
 0x10b   :  { %95 = dma.smem_to_hbm %s174_s11, 16, %s228_s2, [#allocation5]  }
 0x10c   :  { %169 = dma.done.wait [#allocation5], 16  }
 0x10d   :  { %170 = vsyncadd [#allocation5], 4294967280 }
 0x10e   :  { %99 = sfence }
 0x10f   :  { %100 = vsyncpa [#allocation4], 1 }
 0x110   :  { %101 = vsyncpa [#allocation7], 1 }
 0x111   :  { %102 = vsyncpa [#allocation5], 1 }

</bundles_post_ra>
